<compile_context>
chip_gen: v7x
topology: tpu7x:2x2x1
jax: 0.10.0
libtpu: 0.0.40
codegen_flags: <defaults>
</compile_context>

<pallas_src>
import math
from functools import partial

import numpy as np
import jax
import jax.numpy as jnp
from jax.experimental import pallas as pl
from jax.experimental.pallas import tpu as pltpu

_MIB = 1 << 20


# ----------------------------------------------------------------------------
# small helpers
# ----------------------------------------------------------------------------
def _mosaic_params(semantics, vmem_mb=32):
    return pltpu.CompilerParams(
        dimension_semantics=tuple(semantics),
        vmem_limit_bytes=int(vmem_mb * _MIB),
    )


def _largest_divisor_leq(n, cap):
    cap = max(1, min(n, cap))
    for t in range(cap, 0, -1):
        if n % t == 0:
            return t
    return n


def _channel_tile_candidates(d_model, cap=256):
    """Divisors of d_model (descending, <= cap) that satisfy the sublane rule
    (multiple of 8, or the full dimension)."""
    cands = [d for d in range(min(d_model, cap), 0, -1)
             if d_model % d == 0 and (d % 8 == 0 or d == d_model)]
    return cands or [d_model]


def _pick_lane_tile(hw, cin, tdc, itemsize=4, budget_bytes=16 * _MIB):
    """Largest tile of the flattened-pixel axis: full HW if small, else a
    multiple of 128 dividing HW, sized so double-buffered blocks fit VMEM."""
    per_col = max(1, (cin + 3 * tdc) * itemsize * 2)
    cap = max(128, min(8192, budget_bytes // per_col))
    if hw <= cap:
        return hw
    t = (cap // 128) * 128
    while t >= 128:
        if hw % t == 0:
            return t
        t -= 128
    return hw


_UPSAMPLE_MAT_CACHE = {}


def _upsample_matrix(n_in, n_out):
    """1-D bilinear resize matrix, PyTorch align_corners=False convention."""
    key = (n_in, n_out)
    if key not in _UPSAMPLE_MAT_CACHE:
        scale = n_in / n_out
        dst = np.arange(n_out, dtype=np.float64)
        src = (dst + 0.5) * scale - 0.5
        src = np.clip(src, 0.0, None)
        i0 = np.floor(src).astype(np.int64)
        frac = src - i0
        i0 = np.minimum(i0, n_in - 1)
        i1 = np.minimum(i0 + 1, n_in - 1)
        U = np.zeros((n_out, n_in), dtype=np.float64)
        U[np.arange(n_out), i0] += 1.0 - frac
        U[np.arange(n_out), i1] += frac
        _UPSAMPLE_MAT_CACHE[key] = U.astype(np.float32)
    return _UPSAMPLE_MAT_CACHE[key]


# ----------------------------------------------------------------------------
# Kernel 1: plain fused 1x1 conv (+bias) [+ optional precomputed top-down add]
#           NCHW viewed as (B, C, H*W); output is NCHW-flat too.
# ----------------------------------------------------------------------------
def _conv1x1_kernel(x_ref, w_ref, b_ref, o_ref):
    o_ref[...] = (jnp.dot(w_ref[...], x_ref[...],
                          preferred_element_type=jnp.float32)
                  + b_ref[...]).astype(o_ref.dtype)


def _conv1x1_fuse_kernel(x_ref, w_ref, b_ref, td_ref, o_ref, *, scale):
    acc = (jnp.dot(w_ref[...], x_ref[...], preferred_element_type=jnp.float32)
           + b_ref[...] + td_ref[...].astype(jnp.float32))
    if scale != 1.0:
        acc = acc * scale
    o_ref[...] = acc.astype(o_ref.dtype)


def conv1x1(x_nchw, weight, bias, td_nchw=None, fuse_scale=1.0,
            out_dtype=jnp.float32):
    """1x1 Conv2d (stride=1, pad=0), optionally fused with a precomputed
    top-down add.  weight: (d_model, Cin), bias: (d_model,)."""
    B, Cin, H, W = x_nchw.shape
    d_model = weight.shape[0]
    HW = H * W

    x3 = x_nchw.reshape(B, Cin, HW)          # free reshape (NCHW stays NCHW)
    b2 = bias.reshape(d_model, 1)

    tdc = _channel_tile_candidates(d_model, 256)[0]
    thw = _pick_lane_tile(HW, Cin, tdc, itemsize=4)
    # v7x: keep >= 2 grid programs at B == 1 so both TensorCores get work.
    if (B * (d_model // tdc) * (HW // thw) < 2
            and tdc % 16 == 0 and d_model % (tdc // 2) == 0):
        tdc //= 2
    grid = (B, d_model // tdc, HW // thw)

    in_specs = [
        pl.BlockSpec((None, Cin, thw), lambda b, j, p: (b, 0, p)),
        pl.BlockSpec((tdc, Cin), lambda b, j, p: (j, 0)),
        pl.BlockSpec((tdc, 1), lambda b, j, p: (j, 0)),
    ]
    args = [x3, weight, b2]

    if td_nchw is None:
        kern = _conv1x1_kernel
    else:
        td3 = td_nchw.reshape(B, d_model, HW)     # free reshape
        in_specs.append(pl.BlockSpec((None, tdc, thw), lambda b, j, p: (b, j, p)))
        args.append(td3)
        kern = partial(_conv1x1_fuse_kernel, scale=fuse_scale)

    out3 = pl.pallas_call(
        kern,
        out_shape=jax.ShapeDtypeStruct((B, d_model, HW), out_dtype),
        grid=grid,
        in_specs=in_specs,
        out_specs=pl.BlockSpec((None, tdc, thw), lambda b, j, p: (b, j, p)),
        compiler_params=_mosaic_params(("parallel", "parallel", "parallel"), 32),
    )(*args)
    return out3.reshape(B, d_model, H, W)


# ----------------------------------------------------------------------------
# Kernel 2 (the main one): fused 1x1 conv (+bias) + 2x bilinear upsample of the
# coarser-level features + add (+ optional 0.5 scale).  Everything stays in the
# flattened-pixel, lane-dense layout; the only matmuls are the conv itself and
# one small (Wh, W) matmul per source row (W-axis upsample); the H axis is a
# 2-tap FMA.  No reshapes that touch the minor (lane) dimension.
# ----------------------------------------------------------------------------
def _conv_upsample_add_kernel(x_ref, w_ref, b_ref, prev_ref, uwt_ref, o_ref,
                              *, scale, Hh, Wh, W):
    # x_ref:   (Cin, H*W)    flattened pixels of this level
    # w_ref:   (tdc, Cin)    1x1 conv weights
    # b_ref:   (tdc, 1)      bias
    # prev_ref:(tdc, Hh*Wh)  flattened pixels of the coarser level (same chans)
    # uwt_ref: (Wh, W)       1-D bilinear W-axis upsample matrix (transposed)
    # o_ref:   (tdc, H*W)
    lat = (jnp.dot(w_ref[...], x_ref[...], preferred_element_type=jnp.float32)
           + b_ref[...])

    def emit(h, td_row):
        lo, hi = h * W, (h + 1) * W
        acc = lat[:, lo:hi] + td_row
        if scale != 1.0:
            acc = acc * scale
        o_ref[:, lo:hi] = acc.astype(o_ref.dtype)

    # Static unrolled loop over the Hh source rows.  align_corners=False 2x
    # upsample:  out[0] = src[0];  out[2k-1] = .75*src[k-1] + .25*src[k];
    #            out[2k] = .25*src[k-1] + .75*src[k];  out[2*Hh-1] = src[Hh-1].
    t_prev = None
    for k in range(Hh):
        row = prev_ref[:, k * Wh:(k + 1) * Wh].astype(jnp.float32)
        t_k = jnp.dot(row, uwt_ref[...], preferred_element_type=jnp.float32)
        if k == 0:
            emit(0, t_k)
        else:
            emit(2 * k - 1, 0.75 * t_prev + 0.25 * t_k)
            emit(2 * k, 0.25 * t_prev + 0.75 * t_k)
        t_prev = t_k
    emit(2 * Hh - 1, t_prev)


def _fused_vmem_estimate(Cin, tdc, HW, HhWh, x_isize, p_isize, o_isize, W):
    est = 2 * (Cin * HW * x_isize          # x block (double-buffered)
               + tdc * HW * o_isize        # out block
               + tdc * HhWh * p_isize      # prev block
               + Cin * tdc * 4)            # weights
    est += tdc * HW * 4                    # lat temporary (f32)
    est += 2 * tdc * W * 4                 # t_prev / t_k temporaries
    est += (W // 2) * W * 4                # UWt
    return est


def conv1x1_upsample2x_add(x_nchw, weight, bias, prev_nchw, *,
                           fuse_scale=1.0, out_dtype=jnp.float32):
    """out = (conv1x1(x) + bilinear_upsample2x(prev)) * fuse_scale."""
    B, Cin, H, W = x_nchw.shape
    d_model = weight.shape[0]
    Bp, Dp, Hh, Wh = prev_nchw.shape
    assert Bp == B and Dp == d_model and (H, W) == (2 * Hh, 2 * Wh), \
        "FPN levels must be 2x apart"

    HW, HhWh = H * W, Hh * Wh
    x_isize = jnp.dtype(x_nchw.dtype).itemsize
    p_isize = jnp.dtype(prev_nchw.dtype).itemsize
    o_isize = jnp.dtype(out_dtype).itemsize

    budget = 36 * _MIB
    cands = _channel_tile_candidates(d_model, 256)
    if B == 1 and d_model >= 16:
        two = [d for d in cands if d_model // d >= 2]   # keep both v7x TCs busy
        cands = two or cands
    tdc = None
    for d in cands:
        if _fused_vmem_estimate(Cin, d, HW, HhWh,
                                x_isize, p_isize, o_isize, W) <= budget:
            tdc = d
            break

    if tdc is None:
        # TODO(synk): spatially-blocked fused kernel for very large levels; for
        # now fall back to the proven two-kernel Pallas path.
        td = upsample2x(prev_nchw)
        return conv1x1(x_nchw, weight, bias, td_nchw=td,
                       fuse_scale=fuse_scale, out_dtype=out_dtype)

    x3 = x_nchw.reshape(B, Cin, HW)                 # free reshape
    prev3 = prev_nchw.reshape(B, d_model, HhWh)     # free reshape
    b2 = bias.reshape(d_model, 1)
    UWt = jnp.asarray(_upsample_matrix(Wh, W).T)    # (Wh, W)

    est = _fused_vmem_estimate(Cin, tdc, HW, HhWh, x_isize, p_isize, o_isize, W)
    vmem_mb = int(min(48, max(32, (est * 5) // (4 * _MIB) + 4)))

    kern = partial(_conv_upsample_add_kernel,
                   scale=fuse_scale, Hh=Hh, Wh=Wh, W=W)
    out3 = pl.pallas_call(
        kern,
        out_shape=jax.ShapeDtypeStruct((B, d_model, HW), out_dtype),
        grid=(B, d_model // tdc),
        in_specs=[
            pl.BlockSpec((None, Cin, HW), lambda b, j: (b, 0, 0)),
            pl.BlockSpec((tdc, Cin), lambda b, j: (j, 0)),
            pl.BlockSpec((tdc, 1), lambda b, j: (j, 0)),
            pl.BlockSpec((None, tdc, HhWh), lambda b, j: (b, j, 0)),
            pl.BlockSpec((Wh, W), lambda b, j: (0, 0)),
        ],
        out_specs=pl.BlockSpec((None, tdc, HW), lambda b, j: (b, j, 0)),
        compiler_params=_mosaic_params(("parallel", "parallel"), vmem_mb),
    )(x3, weight, b2, prev3, UWt)
    return out3.reshape(B, d_model, H, W)


# ----------------------------------------------------------------------------
# Kernel 3 (fallback only): standalone separable 2x bilinear upsample.
# Used only when a level is too large for the fully fused kernel.
# Note: the in-kernel reshape is layout-trivial only when Hh % 8 == 0.
# ----------------------------------------------------------------------------
def _upsample2x_kernel(prev_ref, uwt_ref, uh_ref, o_ref):
    tdc, H, W = o_ref.shape
    Hh = uh_ref.shape[1]
    t1 = jnp.dot(prev_ref[...], uwt_ref[...], preferred_element_type=jnp.float32)
    t1 = t1.reshape(tdc, Hh, W)
    uh_b = jnp.broadcast_to(uh_ref[...][None, :, :], (tdc, H, Hh))
    o_ref[...] = jnp.einsum("chk,ckw->chw", uh_b, t1,
                            preferred_element_type=jnp.float32).astype(o_ref.dtype)


def upsample2x(prev_nchw, out_dtype=jnp.float32):
    B, C, Hh, Wh = prev_nchw.shape
    H, W = 2 * Hh, 2 * Wh
    UH = jnp.asarray(_upsample_matrix(Hh, H))         # (H, Hh)
    UWt = jnp.asarray(_upsample_matrix(Wh, W).T)      # (Wh, W)
    cap = min(128, max(8, (2 * _MIB) // (H * W * 4)))  # v5e-friendly block cap
    tdc = _largest_divisor_leq(C, cap)
    prev2 = prev_nchw.reshape(B, C * Hh, Wh)          # free reshape
    return pl.pallas_call(
        _upsample2x_kernel,
        out_shape=jax.ShapeDtypeStruct((B, C, H, W), out_dtype),
        grid=(B, C // tdc),
        in_specs=[
            pl.BlockSpec((None, tdc * Hh, Wh), lambda b, j: (b, j, 0)),
            pl.BlockSpec((Wh, W), lambda b, j: (0, 0)),
            pl.BlockSpec((H, Hh), lambda b, j: (0, 0)),
        ],
        out_specs=pl.BlockSpec((None, tdc, H, W), lambda b, j: (b, j, 0, 0)),
        compiler_params=_mosaic_params(("parallel", "parallel"), 32),
    )(prev2, UWt, UH)


# ----------------------------------------------------------------------------
# Kernel 4: PositionEmbeddingSine(num_pos_feats=256).  Gridded over
# (channel blocks, row blocks) with W lane-dense; one sin() per element
# (cos(a) == sin(a + pi/2)); host caches only numpy constants (jit-safe).
# ----------------------------------------------------------------------------
def _posenc_kernel(invf_ref, phase_ref, isy_ref, o_ref, *, H, W):
    tc2, tH, _ = o_ref.shape
    two_pi = 2.0 * math.pi
    eps = 1e-6
    h0 = (pl.program_id(1) * tH).astype(jnp.float32)
    rows = (jax.lax.broadcasted_iota(jnp.float32, (tc2, tH, W), 1)
            + h0 + 1.0) / (float(H) + eps) * two_pi
    cols = (jax.lax.broadcasted_iota(jnp.float32, (tc2, tH, W), 2)
            + 1.0) / (float(W) + eps) * two_pi
    coord = jnp.where(isy_ref[...] > 0.5, rows, cols)
    o_ref[...] = jnp.sin(coord * invf_ref[...] + phase_ref[...]).astype(o_ref.dtype)


_PE_CONST_CACHE = {}


def _pe_constants(num_pos_feats, temperature):
    key = (num_pos_feats, float(temperature))
    if key not in _PE_CONST_CACHE:
        npf = num_pos_feats // 2
        C2 = 2 * npf
        c = np.arange(C2)
        j = np.where(c < npf, c, c - npf)
        invf = np.power(float(temperature), -(2.0 * (j // 2)) / float(npf))
        phase = np.where(j % 2 == 0, 0.0, math.pi / 2.0)
        isy = (c < npf)
        _PE_CONST_CACHE[key] = (
            invf.reshape(C2, 1, 1).astype(np.float32),
            phase.reshape(C2, 1, 1).astype(np.float32),
            isy.reshape(C2, 1, 1).astype(np.float32),
        )
    return _PE_CONST_CACHE[key]


def _pick_pe_row_tile(H, W, tc2, target_bytes=2 * _MIB):
    if tc2 * H * W * 4 <= target_bytes or H % 8 != 0:
        return H
    best = 8
    for cand in range(8, H + 1, 8):
        if H % cand == 0 and tc2 * cand * W * 4 <= target_bytes:
            best = cand
    return best


def position_encoding(H, W, num_pos_feats=256, temperature=10000,
                      dtype=jnp.float32):
    """Returns the sinusoidal encoding with shape (1, num_pos_feats, H, W).
    It is identical for every batch element; broadcast at the consumer."""
    assert num_pos_feats % 2 == 0
    invf, phase, isy = _pe_constants(num_pos_feats, temperature)
    C2 = invf.shape[0]
    tc2 = 64 if C2 % 64 == 0 else C2
    tH = _pick_pe_row_tile(H, W, tc2)
    kern = partial(_posenc_kernel, H=H, W=W)
    pe = pl.pallas_call(
        kern,
        out_shape=jax.ShapeDtypeStruct((C2, H, W), dtype),
        grid=(C2 // tc2, H // tH),
        in_specs=[
            pl.BlockSpec((tc2, 1, 1), lambda c, h: (c, 0, 0)),
            pl.BlockSpec((tc2, 1, 1), lambda c, h: (c, 0, 0)),
            pl.BlockSpec((tc2, 1, 1), lambda c, h: (c, 0, 0)),
        ],
        out_specs=pl.BlockSpec((tc2, tH, W), lambda c, h: (c, h, 0)),
        compiler_params=_mosaic_params(("parallel", "parallel"), 32),
    )(jnp.asarray(invf), jnp.asarray(phase), jnp.asarray(isy))
    return pe[None]


# ----------------------------------------------------------------------------
# FpnNeck forward (glue around the Pallas kernels)
# ----------------------------------------------------------------------------
def fpn_neck_forward(xs, conv_weights, conv_biases, *, fuse_type="sum",
                     fpn_top_down_levels=None, out_dtype=jnp.float32,
                     broadcast_pos_to_batch=False):
    n = len(xs) - 1
    if fpn_top_down_levels is None:
        fpn_top_down_levels = list(range(len(xs)))
    assert fuse_type in {"sum", "avg"}
    fuse_scale = 0.5 if fuse_type == "avg" else 1.0

    out = [None] * len(xs)
    pos = [None] * len(xs)
    prev = None
    for i in range(n, -1, -1):
        x = xs[i]
        w = conv_weights[n - i]
        b = conv_biases[n - i]
        if i in fpn_top_down_levels and prev is not None:
            prev = conv1x1_upsample2x_add(x, w, b, prev,
                                          fuse_scale=fuse_scale,
                                          out_dtype=out_dtype)
        else:
            prev = conv1x1(x, w, b, out_dtype=out_dtype)
        out[i] = prev
        B, _, H, W = prev.shape
        pe = position_encoding(H, W, dtype=prev.dtype)   # (1, 256, H, W)
        pos[i] = (jnp.broadcast_to(pe, (B,) + pe.shape[1:])
                  if broadcast_pos_to_batch else pe)
    return out, pos


# ----------------------------------------------------------------------------
# Pure-JAX references (for self-check only)
# ----------------------------------------------------------------------------
def _ref_forward(xs, ws, bs, fuse_type="sum"):
    n = len(xs) - 1
    outs = [None] * len(xs)
    prev = None
    for i in range(n, -1, -1):
        x = xs[i]
        lat = jnp.einsum("bchw,dc->bdhw", x, ws[n - i]) + bs[n - i][None, :, None, None]
        if prev is not None:
            B_, C_, Hh, Wh = prev.shape
            td = jax.image.resize(prev, (B_, C_, 2 * Hh, 2 * Wh), method="bilinear")
            prev = lat + td
            if fuse_type == "avg":
                prev = prev / 2
        else:
            prev = lat
        outs[i] = prev
    return outs


def _ref_pos(B, H, W, npf=128, temp=10000.0):
    y = jnp.broadcast_to(jnp.arange(1, H + 1, dtype=jnp.float32)[None, :, None], (B, H, W))
    x = jnp.broadcast_to(jnp.arange(1, W + 1, dtype=jnp.float32)[None, None, :], (B, H, W))
    y = y / (H + 1e-6) * (2 * math.pi)
    x = x / (W + 1e-6) * (2 * math.pi)
    dim_t = temp ** (2 * (jnp.arange(npf) // 2) / npf)
    px = x[..., None] / dim_t
    py = y[..., None] / dim_t
    px = jnp.stack((jnp.sin(px[..., 0::2]), jnp.cos(px[..., 1::2])), axis=4).reshape(B, H, W, -1)
    py = jnp.stack((jnp.sin(py[..., 0::2]), jnp.cos(py[..., 1::2])), axis=4).reshape(B, H, W, -1)
    return jnp.transpose(jnp.concatenate((py, px), axis=3), (0, 3, 1, 2))


if __name__ == "__main__":
    key = jax.random.PRNGKey(0)
    d_model = 128
    backbone_channel_list = [128, 64, 32]      # convs[j] in_channels
    B = 2
    spatial = [32, 16, 8]                      # xs[i] is (B, bcl[n-i], s, s)
    n = len(backbone_channel_list) - 1

    keys = jax.random.split(key, len(spatial) + len(backbone_channel_list))

    xs = []
    for i, s in enumerate(spatial):
        c = backbone_channel_list[n - i]
        xs.append(jax.random.normal(keys[i], (B, c, s, s), dtype=jnp.float32))

    conv_weights, conv_biases = [], []
    for j, cin in enumerate(backbone_channel_list):
        wk, bk = jax.random.split(keys[len(spatial) + j])
        conv_weights.append(0.02 * jax.random.normal(wk, (d_model, cin), dtype=jnp.float32))
        conv_biases.append(0.01 * jax.random.normal(bk, (d_model,), dtype=jnp.float32))

    out, pos = fpn_neck_forward(xs, conv_weights, conv_biases, fuse_type="sum")
    jax.block_until_ready(out)
    jax.block_until_ready(pos)

    # Self-check against pure-JAX references.
    ref_out = _ref_forward(xs, conv_weights, conv_biases, fuse_type="sum")
    for i in range(len(xs)):
        np.testing.assert_allclose(np.asarray(out[i]), np.asarray(ref_out[i]),
                                   atol=2e-4, rtol=2e-4)
        _, _, H_, W_ = out[i].shape
        np.testing.assert_allclose(np.asarray(pos[i]), np.asarray(_ref_pos(1, H_, W_)),
                                   atol=1e-4, rtol=1e-4)

    print("KERNEL_OK")
</pallas_src>

<mosaic_0001>
module attributes {stable_mosaic.version = 11 : i64} {
  func.func @_conv1x1_kernel(%arg0: i32, %arg1: i32, %arg2: i32, %arg3: memref<1x128x64xf32, #tpu.memory_space<vmem>>, %arg4: memref<128x128xf32, #tpu.memory_space<vmem>>, %arg5: memref<128x1xf32, #tpu.memory_space<vmem>>, %arg6: memref<1x128x64xf32, #tpu.memory_space<vmem>>) attributes {dimension_semantics = [#tpu.dimension_semantics<parallel>, #tpu.dimension_semantics<parallel>, #tpu.dimension_semantics<parallel>], iteration_bounds = array<i64: 2, 1, 1>, scalar_prefetch = 0 : i64, scratch_operands = 0 : i64, tpu.core_type = #tpu.core_type<tc>, window_params = [{transform_indices = @transform_0, window_bounds = array<i64: 1, 128, 64>}, {transform_indices = @transform_1, window_bounds = array<i64: 128, 128>}, {transform_indices = @transform_2, window_bounds = array<i64: 128, 1>}, {transform_indices = @transform_3, window_bounds = array<i64: 1, 128, 64>}]} {
    %c0 = arith.constant 0 : index
    %c0_0 = arith.constant 0 : index
    %0 = vector.load %arg4[%c0, %c0_0] : memref<128x128xf32, #tpu.memory_space<vmem>>, vector<128x128xf32>
    %c0_1 = arith.constant 0 : index
    %c0_2 = arith.constant 0 : index
    %c0_3 = arith.constant 0 : index
    %1 = vector.load %arg3[%c0_1, %c0_2, %c0_3] : memref<1x128x64xf32, #tpu.memory_space<vmem>>, vector<1x128x64xf32>
    %2 = vector.shape_cast %1 : vector<1x128x64xf32> to vector<128x64xf32>
    %cst = arith.constant dense<0.000000e+00> : vector<128x64xf32>
    %3 = tpu.matmul %0, %2, %cst {dimension_numbers = #tpu.dot_dimension_numbers<[1], [0], [0], [1], [0, 0, 1, 1], [], []>} : vector<128x128xf32>, vector<128x64xf32>, vector<128x64xf32> -> vector<128x64xf32>
    %c0_4 = arith.constant 0 : index
    %c0_5 = arith.constant 0 : index
    %4 = vector.load %arg5[%c0_4, %c0_5] : memref<128x1xf32, #tpu.memory_space<vmem>>, vector<128x1xf32>
    %5 = vector.broadcast %4 : vector<128x1xf32> to vector<128x64xf32>
    %6 = arith.addf %3, %5 : vector<128x64xf32>
    %c0_6 = arith.constant 0 : index
    %c0_7 = arith.constant 0 : index
    %c0_8 = arith.constant 0 : index
    %7 = vector.load %arg6[%c0_6, %c0_7, %c0_8] : memref<1x128x64xf32, #tpu.memory_space<vmem>>, vector<1x128x64xf32>
    %8 = vector.shape_cast %7 : vector<1x128x64xf32> to vector<128x64xf32>
    %9 = vector.shape_cast %6 : vector<128x64xf32> to vector<1x128x64xf32>
    tpu.vector_store %arg6[%c0_6, %c0_7, %c0_8], %9 {strides = array<i32>} : memref<1x128x64xf32, #tpu.memory_space<vmem>>, vector<1x128x64xf32>,
    return
  }
  func.func @transform_0(%arg0: i32, %arg1: i32, %arg2: i32) -> (i32, i32, i32) {
    %c0_i32 = arith.constant 0 : i32
    %c0_i32_0 = arith.constant 0 : i32
    return %arg0, %c0_i32, %arg2 : i32, i32, i32
  }
  func.func @transform_1(%arg0: i32, %arg1: i32, %arg2: i32) -> (i32, i32) {
    %c0_i32 = arith.constant 0 : i32
    %c0_i32_0 = arith.constant 0 : i32
    return %arg1, %c0_i32 : i32, i32
  }
  func.func @transform_2(%arg0: i32, %arg1: i32, %arg2: i32) -> (i32, i32) {
    %c0_i32 = arith.constant 0 : i32
    %c0_i32_0 = arith.constant 0 : i32
    return %arg1, %c0_i32 : i32, i32
  }
  func.func @transform_3(%arg0: i32, %arg1: i32, %arg2: i32) -> (i32, i32, i32) {
    %c0_i32 = arith.constant 0 : i32
    return %arg0, %arg1, %arg2 : i32, i32, i32
  }
}

</mosaic_0001>

<bundles_post_ra>
// kernel: tpu_custom_call.1
= control target key start
LH: loop header
LB: loop body
LE: loop exit
PB: predicated region body
PF: predicated region fallthrough
CT: control target
= control target key end

     0   :  { %s907_s12 = smov 0   ;;  %s909_s13 = smov 0   ;;  %s1095_s0 = inlined_call_operand.vmem [shape: f32[2,128,64], index: 0, kind: input, shape index: {}]   ;;  %s1096_s1 = inlined_call_operand.vmem [shape: f32[128,128], index: 1, kind: input, shape index: {}]   ;;  %s1097_s2 = inlined_call_operand.vmem [shape: f32[128,1], index: 2, kind: input, shape index: {}]   ;;  %s1098_s3 = inlined_call_operand.vmem [shape: f32[2,128,64], index: 3, kind: output, shape index: {}]  }
   0x1   :  { %s911_s14 = smov 0  }
   0x2 LB: > { %s32_s15 = sadd.s32 1, %s880_s13  ;;  %p690_p0 = scmp.ge.s32.totalorder %s884_s14, 1  ;;  %s884_s14 = sphi %s911_s14, %s13_s14   ;;  %s880_s13 = sphi %s909_s13, %s1100_s13   ;;  %s876_s12 = sphi %s907_s12, %s1099_s12  }
   0x3   : > { %p34_p1 = scmp.ge.s32.totalorder %s32_s15, 2  ;;  %p187_p2 = scmp.lt.s32.totalorder %s884_s14, 3 }
   0x5   : > { %s1102_s15 = smov (%p34_p1, %s32_s15), 0  ;;  %p188_p3 = pnand %p690_p0, %p187_p2 }
   0x6   : > { %p231_p4 = scmp.lt.s32.totalorder (!%p188_p3), %s876_s12, 1  ;;  %v264_v0 = vld [vmem:[%s1096_s1] sm:$0xff] (!%p188_p3)  ;;  %v886_v2 = vmov (!%p188_p3), 0   ;;  %v298_v3 = vld [vmem:[%s1097_s2 + $0x10] sm:$0xff] (!%p188_p3)  ;;  %v299_v14 = vld [vmem:[%s1097_s2 + $0x18] sm:$0xff] (!%p188_p3)  ;;  %vm537_vm0 = vcmask (!%p188_p3), 523264  }
   0x7   : > { %191 = sbr.rel (%p188_p3) target bundleno = 280 (0x118), region = 32  ;;  %v272_v1 = vld [vmem:[%s1096_s1 + $0x40] sm:$0xff] (!%p188_p3)  ;;  %763 = vmatprep.mubr.f32.mxu0 (!%p188_p3), %v264_v0  ;;  %861 = vset.pattern.permute.xlu1 (!%p188_p3), %v886_v2  ;;  %v297_v15 = vld [vmem:[%s1097_s2 + $0x8] sm:$0xff] (!%p188_p3)  ;;  %v303_v23 = vld [vmem:[%s1097_s2 + $0x38] sm:$0xff] (!%p188_p3) }
   0x8   : > { %775 = vmatprep.mubr.f32.mxu1 (!%p188_p3), %v272_v1  ;;  %860 = vset.pattern.permute.xlu0 (!%p188_p3), %v886_v2  ;;  %v296_v4 = vld [vmem:[%s1097_s2] sm:$0xff] (!%p188_p3)  ;;  %v301_v18 = vld [vmem:[%s1097_s2 + $0x28] sm:$0xff] (!%p188_p3)  ;;  %v302_v24 = vld [vmem:[%s1097_s2 + $0x30] sm:$0xff] (!%p188_p3) }
   0x9   : > { %324 = vperm.xlu1 (!%p188_p3), %861, %v298_v3   ;;  %314 = vperm.xlu0 (!%p188_p3), %860, %v296_v4   ;;  %v300_v19 = vld [vmem:[%s1097_s2 + $0x20] sm:$0xff] (!%p188_p3)  ;;  %v305_v28 = vld [vmem:[%s1097_s2 + $0x48] sm:$0xff] (!%p188_p3)  ;;  %v307_v33 = vld [vmem:[%s1097_s2 + $0x58] sm:$0xff] (!%p188_p3) }
   0xa   : > { %v304_v29 = vld [vmem:[%s1097_s2 + $0x40] sm:$0xff] (!%p188_p3)  ;;  %v306_v34 = vld [vmem:[%s1097_s2 + $0x50] sm:$0xff] (!%p188_p3)  ;;  %v309_v38 = vld [vmem:[%s1097_s2 + $0x68] sm:$0xff] (!%p188_p3) }
   0xb   : > { %v308_v39 = vld [vmem:[%s1097_s2 + $0x60] sm:$0xff] (!%p188_p3)  ;;  %v311_v41 = vld [vmem:[%s1097_s2 + $0x78] sm:$0xff] (!%p188_p3)  ;;  %v310_v42 = vld [vmem:[%s1097_s2 + $0x70] sm:$0xff] (!%p188_p3) }
   0xc   : > { %v265_v43 = vld [vmem:[%s1096_s1 + $0x8] sm:$0xff] (!%p188_p3)  ;;  %v266_v45 = vld [vmem:[%s1096_s1 + $0x10] sm:$0xff] (!%p188_p3)  ;;  %v267_v47 = vld [vmem:[%s1096_s1 + $0x18] sm:$0xff] (!%p188_p3) }
   0xd   : > { %329 = vperm.xlu1 (!%p188_p3), %861, %v299_v14   ;;  %319 = vperm.xlu0 (!%p188_p3), %860, %v297_v15   ;;  %v273_v44 = vld [vmem:[%s1096_s1 + $0x48] sm:$0xff] (!%p188_p3)  ;;  %v274_v46 = vld [vmem:[%s1096_s1 + $0x50] sm:$0xff] (!%p188_p3)  ;;  %v275_v48 = vld [vmem:[%s1096_s1 + $0x58] sm:$0xff] (!%p188_p3) }
   0xe   : > { %s1104_s12 = smov (!%p231_p4, %s876_s12), 1  ;;  %v268_v49 = vld [vmem:[%s1096_s1 + $0x20] sm:$0xff]  ;;  %v269_v51 = vld [vmem:[%s1096_s1 + $0x28] sm:$0xff]  ;;  %v270_v53 = vld [vmem:[%s1096_s1 + $0x30] sm:$0xff] }
   0xf   : > { %s697_s20 = sshll.u32 %s1104_s12, 7  ;;  %v276_v50 = vld [vmem:[%s1096_s1 + $0x60] sm:$0xff]  ;;  %v277_v52 = vld [vmem:[%s1096_s1 + $0x68] sm:$0xff]  ;;  %v278_v54 = vld [vmem:[%s1096_s1 + $0x70] sm:$0xff] }
  0x10   : > { %s939_s23 = scalar_lea.vmem %s1095_s0, %s697_s20  ;;  %v271_v55 = vld [vmem:[%s1096_s1 + $0x38] sm:$0xff]  ;;  %s1052_s19 = scalar_lea.vmem %s1098_s3, %s697_s20 }
  0x11   : > { %v280_v5 = vld [vmem:[%s939_s23] sm:$0xff]  ;;  %v281_v6 = vld [vmem:[%s939_s23 + $0x8] sm:$0xff]  ;;  %v282_v7 = vld [vmem:[%s939_s23 + $0x10] sm:$0xff]  ;;  %339 = vperm.xlu1 %861, %v301_v18   ;;  %334 = vperm.xlu0 %860, %v300_v19  }
  0x12   : > { %v787_v8 = vpack.c.bf16 %v281_v6, %v280_v5  ;;  %v283_v9 = vld [vmem:[%s939_s23 + $0x18] sm:$0xff]  ;;  %v284_v11 = vld [vmem:[%s939_s23 + $0x20] sm:$0xff]  ;;  %v285_v12 = vld [vmem:[%s939_s23 + $0x28] sm:$0xff] }
  0x13   : > { %v791_v10 = vpack.c.bf16 %v283_v9, %v282_v7  ;;  %v795_v13 = vpack.c.bf16 %v285_v12, %v284_v11  ;;  %v286_v16 = vld [vmem:[%s939_s23 + $0x30] sm:$0xff]  ;;  %v287_v17 = vld [vmem:[%s939_s23 + $0x38] sm:$0xff]  ;;  %v288_v21 = vld [vmem:[%s939_s23 + $0x40] sm:$0xff] }
  0x14   : > { %788 = vmatprep.subr.bf16.mxu0 %v787_v8  ;;  %819 = vmatprep.subr.bf16.mxu1 %v787_v8  ;;  %v799_v20 = vpack.c.bf16 %v287_v17, %v286_v16  ;;  %v289_v22 = vld [vmem:[%s939_s23 + $0x48] sm:$0xff]  ;;  %v290_v26 = vld [vmem:[%s939_s23 + $0x50] sm:$0xff]  ;;  %v291_v27 = vld [vmem:[%s939_s23 + $0x58] sm:$0xff] }
  0x15   : > { %790 = vmatpush3.bf16.msra.mxu0 %v787_v8  ;;  %827 = vmatpush3.bf16.msra.mxu1 %v787_v8  ;;  %v803_v25 = vpack.c.bf16 %v289_v22, %v288_v21  ;;  %v807_v30 = vpack.c.bf16 %v291_v27, %v290_v26  ;;  %v292_v31 = vld [vmem:[%s939_s23 + $0x60] sm:$0xff]  ;;  %v293_v32 = vld [vmem:[%s939_s23 + $0x68] sm:$0xff]  ;;  %v294_v36 = vld [vmem:[%s939_s23 + $0x70] sm:$0xff] }
  0x16   : > { %792 = vmatprep.subr.bf16.mxu0 %v791_v10  ;;  %820 = vmatprep.subr.bf16.mxu1 %v791_v10  ;;  %v811_v35 = vpack.c.bf16 %v293_v32, %v292_v31  ;;  %v295_v37 = vld [vmem:[%s939_s23 + $0x78] sm:$0xff] }
  0x17   : > { %349 = vperm.xlu1 %861, %v303_v23   ;;  %344 = vperm.xlu0 %860, %v302_v24   ;;  %v815_v40 = vpack.c.bf16 %v295_v37, %v294_v36  ;;  %v279_v56 = vld [vmem:[%s1096_s1 + $0x78] sm:$0xff] }
  0x19   : > { %794 = vmatpush3.bf16.msra.mxu0 %v791_v10  ;;  %828 = vmatpush3.bf16.msra.mxu1 %v791_v10 }
  0x1a   : > { %796 = vmatprep.subr.bf16.mxu0 %v795_v13  ;;  %821 = vmatprep.subr.bf16.mxu1 %v795_v13 }
  0x1b   : > { %359 = vperm.xlu1 %861, %v305_v28   ;;  %354 = vperm.xlu0 %860, %v304_v29  }
  0x1d   : > { %798 = vmatpush3.bf16.msra.mxu0 %v795_v13  ;;  %829 = vmatpush3.bf16.msra.mxu1 %v795_v13 }
  0x1e   : > { %800 = vmatprep.subr.bf16.mxu0 %v799_v20  ;;  %822 = vmatprep.subr.bf16.mxu1 %v799_v20 }
  0x1f   : > { %369 = vperm.xlu1 %861, %v307_v33   ;;  %364 = vperm.xlu0 %860, %v306_v34  }
  0x21   : > { %802 = vmatpush3.bf16.msra.mxu0 %v799_v20  ;;  %830 = vmatpush3.bf16.msra.mxu1 %v799_v20 }
  0x22   : > { %804 = vmatprep.subr.bf16.mxu0 %v803_v25  ;;  %823 = vmatprep.subr.bf16.mxu1 %v803_v25 }
  0x23   : > { %379 = vperm.xlu1 %861, %v309_v38   ;;  %374 = vperm.xlu0 %860, %v308_v39  }
  0x25   : > { %806 = vmatpush3.bf16.msra.mxu0 %v803_v25  ;;  %831 = vmatpush3.bf16.msra.mxu1 %v803_v25 }
  0x26   : > { %808 = vmatprep.subr.bf16.mxu0 %v807_v30  ;;  %824 = vmatprep.subr.bf16.mxu1 %v807_v30 }
  0x27   : > { %389 = vperm.xlu1 %861, %v311_v41   ;;  %384 = vperm.xlu0 %860, %v310_v42  }
  0x29   : > { %810 = vmatpush3.bf16.msra.mxu0 %v807_v30  ;;  %832 = vmatpush3.bf16.msra.mxu1 %v807_v30 }
  0x2a   : > { %812 = vmatprep.subr.bf16.mxu0 %v811_v35  ;;  %825 = vmatprep.subr.bf16.mxu1 %v811_v35 }
  0x2d   : > { %814 = vmatpush3.bf16.msra.mxu0 %v811_v35  ;;  %833 = vmatpush3.bf16.msra.mxu1 %v811_v35 }
  0x2e   : > { %816 = vmatprep.subr.bf16.mxu0 %v815_v40  ;;  %826 = vmatprep.subr.bf16.mxu1 %v815_v40 }
  0x31   : > { %818 = vmatpush3.bf16.msra.mxu0 %v815_v40  ;;  %834 = vmatpush3.bf16.msra.mxu1 %v815_v40 }
  0x34   : > { %764 = vmatmul.mubr.f32.vlgmr.msra.gmra.mrb[0].mxu0 %v265_v43  ;;  %776 = vmatmul.mubr.f32.vlgmr.msra.gmra.mrb[0].mxu1 %v273_v44 }
  0x35   : > { %766 = vmatprep.mubr.f32.mxu0 %v266_v45  ;;  %778 = vmatprep.mubr.f32.mxu1 %v274_v46 }
  0x38   : > { %767 = vmatmul.mubr.f32.gmra.mrb[2].mxu0 %v267_v47  ;;  %779 = vmatmul.mubr.f32.gmra.mrb[2].mxu1 %v275_v48 }
  0x39   : > { %769 = vmatprep.mubr.f32.mxu0 %v268_v49  ;;  %781 = vmatprep.mubr.f32.mxu1 %v276_v50 }
  0x3c   : > { %770 = vmatmul.mubr.f32.gmra.mrb[4].mxu0 %v269_v51  ;;  %782 = vmatmul.mubr.f32.gmra.mrb[4].mxu1 %v277_v52 }
  0x3d   : > { %772 = vmatprep.mubr.f32.mxu0 %v270_v53  ;;  %784 = vmatprep.mubr.f32.mxu1 %v278_v54 }
  0x40   : > { %773 = vmatmul.mubr.f32.gmra.mrb[6].mxu0 %v271_v55  ;;  %785 = vmatmul.mubr.f32.gmra.mrb[6].mxu1 %v279_v56 }
  0x88   : > { %v325_v57 = vpop.permute.xlu1 %324  ;;  %v315_v58 = vpop.permute.xlu0 %314 }
  0x8c   : > { %v330_v59 = vpop.permute.xlu1 %329  ;;  %v320_v60 = vpop.permute.xlu0 %319 }
  0x90   : > { %v340_v61 = vpop.permute.xlu1 %339  ;;  %v335_v62 = vpop.permute.xlu0 %334 }
  0x96   : > { %v350_v63 = vpop.permute.xlu1 %349  ;;  %v345_v0 = vpop.permute.xlu0 %344 }
  0x9a   : > { %v360_v1 = vpop.permute.xlu1 %359  ;;  %v355_v2 = vpop.permute.xlu0 %354 }
  0x9e   : > { %v370_v3 = vpop.permute.xlu1 %369  ;;  %v365_v4 = vpop.permute.xlu0 %364 }
  0xa2   : > { %v380_v13 = vpop.permute.xlu1 %379  ;;  %v375_v14 = vpop.permute.xlu0 %374 }
  0xa6   : > { %v390_v31 = vpop.permute.xlu1 %389  ;;  %v385_v32 = vpop.permute.xlu0 %384 }
 0x107   : > { %v765_v5 = vpop.f32.mrb[0].mxu0  ;;  %v777_v6 = vpop.f32.mrb[0].mxu1 }
 0x108   : > { %v464_v7 = vadd.f32 %v765_v5, %v320_v60  ;;  %v504_v8 = vadd.f32 %v777_v6, %v360_v1  ;;  %v458_v9 = vpop.f32.mrb[1].mxu0  ;;  %v498_v10 = vpop.f32.mrb[1].mxu1 }
 0x109   : > { %v459_v11 = vadd.f32 %v458_v9, %v315_v58  ;;  %v499_v12 = vadd.f32 %v498_v10, %v355_v2 }
 0x10a   : > { %539 = vst.msk [vmem:[%s1052_s19 + $0x8] sm:$0xff] %vm537_vm0, %v464_v7  ;;  %547 = vst.msk [vmem:[%s1052_s19 + $0x48] sm:$0xff] %vm537_vm0, %v504_v8 }
 0x10b   : > { %538 = vst.msk [vmem:[%s1052_s19] sm:$0xff] %vm537_vm0, %v459_v11  ;;  %546 = vst.msk [vmem:[%s1052_s19 + $0x40] sm:$0xff] %vm537_vm0, %v499_v12  ;;  %v768_v15 = vpop.f32.mrb[2].mxu0  ;;  %v780_v16 = vpop.f32.mrb[2].mxu1 }
 0x10c   : > { %v474_v17 = vadd.f32 %v768_v15, %v330_v59  ;;  %v514_v18 = vadd.f32 %v780_v16, %v370_v3  ;;  %v468_v19 = vpop.f32.mrb[3].mxu0  ;;  %v508_v20 = vpop.f32.mrb[3].mxu1 }
 0x10d   : > { %v469_v21 = vadd.f32 %v468_v19, %v325_v57  ;;  %v509_v22 = vadd.f32 %v508_v20, %v365_v4 }
 0x10e   : > { %541 = vst.msk [vmem:[%s1052_s19 + $0x18] sm:$0xff] %vm537_vm0, %v474_v17  ;;  %549 = vst.msk [vmem:[%s1052_s19 + $0x58] sm:$0xff] %vm537_vm0, %v514_v18 }
 0x10f   : > { %540 = vst.msk [vmem:[%s1052_s19 + $0x10] sm:$0xff] %vm537_vm0, %v469_v21  ;;  %548 = vst.msk [vmem:[%s1052_s19 + $0x50] sm:$0xff] %vm537_vm0, %v509_v22  ;;  %v771_v23 = vpop.f32.mrb[4].mxu0  ;;  %v783_v24 = vpop.f32.mrb[4].mxu1 }
 0x110   : > { %v484_v25 = vadd.f32 %v771_v23, %v340_v61  ;;  %v524_v26 = vadd.f32 %v783_v24, %v380_v13  ;;  %v478_v27 = vpop.f32.mrb[5].mxu0  ;;  %v518_v28 = vpop.f32.mrb[5].mxu1 }
 0x111   : > { %v479_v29 = vadd.f32 %v478_v27, %v335_v62  ;;  %v519_v30 = vadd.f32 %v518_v28, %v375_v14 }
 0x112   : > { %543 = vst.msk [vmem:[%s1052_s19 + $0x28] sm:$0xff] %vm537_vm0, %v484_v25  ;;  %551 = vst.msk [vmem:[%s1052_s19 + $0x68] sm:$0xff] %vm537_vm0, %v524_v26 }
 0x113   : > { %542 = vst.msk [vmem:[%s1052_s19 + $0x20] sm:$0xff] %vm537_vm0, %v479_v29  ;;  %550 = vst.msk [vmem:[%s1052_s19 + $0x60] sm:$0xff] %vm537_vm0, %v519_v30  ;;  %v774_v33 = vpop.f32.mrb[6].mxu0  ;;  %v786_v34 = vpop.f32.mrb[6].mxu1 }
 0x114   : > { %v494_v35 = vadd.f32 %v774_v33, %v350_v63  ;;  %v534_v36 = vadd.f32 %v786_v34, %v390_v31  ;;  %v488_v37 = vpop.f32.mrb[7].mxu0  ;;  %v528_v38 = vpop.f32.mrb[7].mxu1 }
 0x115   : > { %v489_v39 = vadd.f32 %v488_v37, %v345_v0  ;;  %v529_v40 = vadd.f32 %v528_v38, %v385_v32 }
 0x116   : > { %545 = vst.msk [vmem:[%s1052_s19 + $0x38] sm:$0xff] %vm537_vm0, %v494_v35  ;;  %553 = vst.msk [vmem:[%s1052_s19 + $0x78] sm:$0xff] %vm537_vm0, %v534_v36 }
 0x117   : > { %544 = vst.msk [vmem:[%s1052_s19 + $0x30] sm:$0xff] %vm537_vm0, %v489_v39  ;;  %552 = vst.msk [vmem:[%s1052_s19 + $0x70] sm:$0xff] %vm537_vm0, %v529_v40 }
 0x118 PF: > { %s13_s14 = sadd.s32 1, %s884_s14   ;;  %s1099_s12 = smov %s880_s13 }
 0x119   : > { %p10_p5 = scmp.ge.s32.totalorder %s13_s14, 4   ;;  %s1100_s13 = smov %s1102_s15 }
 0x11b   :  { %12 = sbr.rel (!%p10_p5) target bundleno = 2 (0x2), region = 68 }

</bundles_post_ra>
